<compile_context>
chip_gen: v6e
topology: v6e:2x2x1
jax: 0.10.0
libtpu: 0.0.40
codegen_flags: <defaults>
</compile_context>

<pallas_src>
import jax
import jax.numpy as jnp
from jax.experimental import pallas as pl
from jax.experimental.pallas import tpu as pltpu


def _round_up(n, m):
    return ((n + m - 1) // m) * m


def shared_agent_kernel(x_ref, ws_ref, bs_ref, wh_ref, bh_ref, out_ref):
    # shared trunk: h = relu(x @ Ws + bs)   (f32 MXU accumulation, f32 bias;
    # bias row-broadcasts on the add)
    h = jnp.dot(x_ref[...], ws_ref[...],
                preferred_element_type=jnp.float32) + bs_ref[...]
    h = jnp.maximum(h, 0.0).astype(wh_ref.dtype)   # bf16 feed on v6e/v7x path
    # fused actor+critic head: [logits | value] = h @ Wh + bh   (OUT = ACT+1)
    out_ref[...] = (jnp.dot(h, wh_ref[...],
                            preferred_element_type=jnp.float32)
                    + bh_ref[...]).astype(out_ref.dtype)


def prepare_params(ws, bs, wa, ba, wc, bc, *, compute_dtype=jnp.float32):
    """One-time parameter prep, hoisted out of the per-call forward.

    Pads only the hidden axis to a full 128-lane tile (exact math: padded
    rows/cols are zero), fuses the actor and critic heads into a single
    (HID_P, ACT+1) weight so one MXU pass produces both outputs, and casts
    the matmul operands to `compute_dtype` (biases stay f32).
    """
    OBS, HID = ws.shape
    ACT = wa.shape[1]
    HID_P = _round_up(HID, 128)
    OUT = ACT + 1
    f32 = jnp.float32

    ws_p = jnp.zeros((OBS, HID_P), f32).at[:, :HID].set(ws.astype(f32))
    bs_p = jnp.zeros((1, HID_P), f32).at[:, :HID].set(bs.astype(f32))
    wh = jnp.concatenate([wa, wc], axis=1).astype(f32)    # (HID, ACT+1)
    bh = jnp.concatenate([ba, bc], axis=1).astype(f32)    # (1, ACT+1)
    wh_p = jnp.zeros((HID_P, OUT), f32).at[:HID, :].set(wh)

    return (ws_p.astype(compute_dtype), bs_p, wh_p.astype(compute_dtype), bh)


def shared_agent_forward(x, params, *, batch_tile=1024):
    ws_p, bs_p, wh_p, bh = params
    B, OBS = x.shape
    HID_P = ws_p.shape[1]
    OUT = wh_p.shape[1]          # ACT + 1
    ACT = OUT - 1

    # Batch tile: multiple of 8 sublanes, large enough to amortize the
    # ~0.35 us per-grid-step overhead. No batch padding: the last block may
    # overhang B; Pallas masks its output writes (math is purely row-wise).
    TB = min(batch_tile, _round_up(B, 8))
    # v7x megacore: once the batch is big, keep >= 2 grid steps so the
    # "parallel" batch axis shards across both TensorCores.
    if B > 1024:
        TB = min(TB, _round_up(pl.cdiv(B, 2), 8))
    grid = (pl.cdiv(B, TB),)

    # No-op in the f32 path; bf16 on the v6e/v7x path (halves x HBM reads
    # and runs the MXU at native rate).
    x = x.astype(ws_p.dtype)

    # VMEM at TB=1024, f32: x tile 128 KiB + out tile <=512 KiB (lane-padded)
    # + weights ~80 KiB, all double-buffered -> ~1.5 MiB: trivially inside
    # the scoped limit on v5e/v6e/v7x.
    out = pl.pallas_call(
        shared_agent_kernel,
        out_shape=jax.ShapeDtypeStruct((B, OUT), jnp.float32),
        grid_spec=pltpu.PrefetchScalarGridSpec(
            num_scalar_prefetch=0,
            grid=grid,
            in_specs=[
                # batch-tiled activations: last block dim = full OBS (legal,
                # no HBM padding of the feature axis)
                pl.BlockSpec((TB, OBS), lambda i: (i, 0)),
                # weights / biases: resident in VMEM across the whole grid
                pl.BlockSpec((OBS, HID_P), lambda i: (0, 0)),
                pl.BlockSpec((1, HID_P), lambda i: (0, 0)),
                pl.BlockSpec((HID_P, OUT), lambda i: (0, 0)),
                pl.BlockSpec((1, OUT), lambda i: (0, 0)),
            ],
            # Narrow output: full last dim = ACT+1 -> contiguous writeback of
            # only the useful bytes (accepts masked vst inside the kernel).
            out_specs=pl.BlockSpec((TB, OUT), lambda i: (i, 0)),
        ),
        compiler_params=pltpu.CompilerParams(
            dimension_semantics=("parallel",)),
    )(x, ws_p, bs_p, wh_p, bh)

    logits = out[:, :ACT]
    value = out[:, ACT:]
    return logits, value


def reference_forward(x, ws, bs, wa, ba, wc, bc):
    h = jnp.maximum(x @ ws + bs, 0.0)
    return h @ wa + ba, h @ wc + bc


if __name__ == "__main__":
    # Small shapes: obs_dim=32, hidden=64, act_dim=16, value_dim=1.
    OBS, HID, ACT = 32, 64, 16

    key = jax.random.PRNGKey(0)
    k = jax.random.split(key, 10)
    ws = jax.random.normal(k[1], (OBS, HID), dtype=jnp.float32) * 0.1
    bs = jax.random.normal(k[2], (1, HID), dtype=jnp.float32) * 0.1
    wa = jax.random.normal(k[3], (HID, ACT), dtype=jnp.float32) * 0.1
    ba = jax.random.normal(k[4], (1, ACT), dtype=jnp.float32) * 0.1
    wc = jax.random.normal(k[5], (HID, 1), dtype=jnp.float32) * 0.1
    bc = jax.random.normal(k[6], (1, 1), dtype=jnp.float32) * 0.1

    # One-time parameter prep (f32 exact path).
    params_f32 = prepare_params(ws, bs, wa, ba, wc, bc)

    # Case 1: tiny batch, single grid step.
    B1 = 8
    x1 = jax.random.normal(k[0], (B1, OBS), dtype=jnp.float32)
    l1, v1 = shared_agent_forward(x1, params_f32)
    jax.block_until_ready((l1, v1))
    rl1, rv1 = reference_forward(x1, ws, bs, wa, ba, wc, bc)
    assert l1.shape == (B1, ACT) and v1.shape == (B1, 1)
    assert jnp.allclose(l1, rl1, atol=1e-4, rtol=1e-4)
    assert jnp.allclose(v1, rv1, atol=1e-4, rtol=1e-4)

    # Case 2: multi-step grid with a ragged, masked final block
    # (B=300, batch_tile=128 -> grid=3, last block covers rows 256..383).
    B2 = 300
    x2 = jax.random.normal(k[7], (B2, OBS), dtype=jnp.float32)
    l2, v2 = shared_agent_forward(x2, params_f32, batch_tile=128)
    jax.block_until_ready((l2, v2))
    rl2, rv2 = reference_forward(x2, ws, bs, wa, ba, wc, bc)
    assert l2.shape == (B2, ACT) and v2.shape == (B2, 1)
    assert jnp.allclose(l2, rl2, atol=1e-4, rtol=1e-4)
    assert jnp.allclose(v2, rv2, atol=1e-4, rtol=1e-4)

    # Case 3: larger batch -> exercises the v7x dual-TC split (B > 1024
    # forces >= 2 "parallel" grid steps; ragged last block again).
    B3 = 1500
    x3 = jax.random.normal(k[8], (B3, OBS), dtype=jnp.float32)
    l3, v3 = shared_agent_forward(x3, params_f32)
    jax.block_until_ready((l3, v3))
    rl3, rv3 = reference_forward(x3, ws, bs, wa, ba, wc, bc)
    assert l3.shape == (B3, ACT) and v3.shape == (B3, 1)
    assert jnp.allclose(l3, rl3, atol=1e-4, rtol=1e-4)
    assert jnp.allclose(v3, rv3, atol=1e-4, rtol=1e-4)

    # Case 4: bf16 compute path (recommended on v6e/v7x), relaxed tolerance.
    params_bf16 = prepare_params(ws, bs, wa, ba, wc, bc,
                                 compute_dtype=jnp.bfloat16)
    l4, v4 = shared_agent_forward(x2, params_bf16)
    jax.block_until_ready((l4, v4))
    assert l4.shape == (B2, ACT) and v4.shape == (B2, 1)
    assert jnp.allclose(l4, rl2, atol=5e-2, rtol=5e-2)
    assert jnp.allclose(v4, rv2, atol=5e-2, rtol=5e-2)

    print("KERNEL_OK")
</pallas_src>

<mosaic_0001>
module attributes {stable_mosaic.version = 11 : i64} {
  func.func @shared_agent_kernel(%arg0: i32, %arg1: memref<8x32xf32, #tpu.memory_space<vmem>>, %arg2: memref<32x128xf32, #tpu.memory_space<vmem>>, %arg3: memref<1x128xf32, #tpu.memory_space<vmem>>, %arg4: memref<128x17xf32, #tpu.memory_space<vmem>>, %arg5: memref<1x17xf32, #tpu.memory_space<vmem>>, %arg6: memref<8x17xf32, #tpu.memory_space<vmem>>) attributes {dimension_semantics = [#tpu.dimension_semantics<parallel>], iteration_bounds = array<i64: 1>, scalar_prefetch = 0 : i64, scratch_operands = 0 : i64, tpu.core_type = #tpu.core_type<tc>, window_params = [{transform_indices = @transform_0, window_bounds = array<i64: 8, 32>}, {pipeline_mode = #tpu.pipeline_mode<synchronous>, transform_indices = @transform_1, window_bounds = array<i64: 32, 128>}, {pipeline_mode = #tpu.pipeline_mode<synchronous>, transform_indices = @transform_2, window_bounds = array<i64: 1, 128>}, {pipeline_mode = #tpu.pipeline_mode<synchronous>, transform_indices = @transform_3, window_bounds = array<i64: 128, 17>}, {pipeline_mode = #tpu.pipeline_mode<synchronous>, transform_indices = @transform_4, window_bounds = array<i64: 1, 17>}, {transform_indices = @transform_5, window_bounds = array<i64: 8, 17>}]} {
    %c0 = arith.constant 0 : index
    %c0_0 = arith.constant 0 : index
    %0 = vector.load %arg1[%c0, %c0_0] : memref<8x32xf32, #tpu.memory_space<vmem>>, vector<8x32xf32>
    %c0_1 = arith.constant 0 : index
    %c0_2 = arith.constant 0 : index
    %1 = vector.load %arg2[%c0_1, %c0_2] : memref<32x128xf32, #tpu.memory_space<vmem>>, vector<32x128xf32>
    %cst = arith.constant dense<0.000000e+00> : vector<8x128xf32>
    %2 = tpu.matmul %0, %1, %cst {dimension_numbers = #tpu.dot_dimension_numbers<[1], [0], [0], [1], [0, 0, 1, 1], [], []>} : vector<8x32xf32>, vector<32x128xf32>, vector<8x128xf32> -> vector<8x128xf32>
    %c0_3 = arith.constant 0 : index
    %c0_4 = arith.constant 0 : index
    %3 = vector.load %arg3[%c0_3, %c0_4] : memref<1x128xf32, #tpu.memory_space<vmem>>, vector<1x128xf32>
    %4 = vector.broadcast %3 : vector<1x128xf32> to vector<8x128xf32>
    %5 = arith.addf %2, %4 : vector<8x128xf32>
    %cst_5 = arith.constant 0.000000e+00 : f32
    %6 = vector.broadcast %cst_5 : f32 to vector<8x128xf32>
    %7 = arith.maximumf %5, %6 : vector<8x128xf32>
    %c0_6 = arith.constant 0 : index
    %c0_7 = arith.constant 0 : index
    %8 = vector.load %arg4[%c0_6, %c0_7] : memref<128x17xf32, #tpu.memory_space<vmem>>, vector<128x17xf32>
    %cst_8 = arith.constant dense<0.000000e+00> : vector<8x17xf32>
    %9 = tpu.matmul %7, %8, %cst_8 {dimension_numbers = #tpu.dot_dimension_numbers<[1], [0], [0], [1], [0, 0, 1, 1], [], []>} : vector<8x128xf32>, vector<128x17xf32>, vector<8x17xf32> -> vector<8x17xf32>
    %c0_9 = arith.constant 0 : index
    %c0_10 = arith.constant 0 : index
    %10 = vector.load %arg5[%c0_9, %c0_10] : memref<1x17xf32, #tpu.memory_space<vmem>>, vector<1x17xf32>
    %11 = vector.broadcast %10 : vector<1x17xf32> to vector<8x17xf32>
    %12 = arith.addf %9, %11 : vector<8x17xf32>
    %c0_11 = arith.constant 0 : index
    %c0_12 = arith.constant 0 : index
    %13 = vector.load %arg6[%c0_11, %c0_12] : memref<8x17xf32, #tpu.memory_space<vmem>>, vector<8x17xf32>
    tpu.vector_store %arg6[%c0_11, %c0_12], %12 {strides = array<i32>} : memref<8x17xf32, #tpu.memory_space<vmem>>, vector<8x17xf32>,
    return
  }
  func.func @transform_0(%arg0: i32) -> (i32, i32) {
    %c0_i32 = arith.constant 0 : i32
    %c0_i32_0 = arith.constant 0 : i32
    return %arg0, %c0_i32 : i32, i32
  }
  func.func @transform_1(%arg0: i32) -> (i32, i32) {
    %c0_i32 = arith.constant 0 : i32
    %c0_i32_0 = arith.constant 0 : i32
    %c0_i32_1 = arith.constant 0 : i32
    return %c0_i32, %c0_i32_0 : i32, i32
  }
  func.func @transform_2(%arg0: i32) -> (i32, i32) {
    %c0_i32 = arith.constant 0 : i32
    %c0_i32_0 = arith.constant 0 : i32
    %c0_i32_1 = arith.constant 0 : i32
    return %c0_i32, %c0_i32_0 : i32, i32
  }
  func.func @transform_3(%arg0: i32) -> (i32, i32) {
    %c0_i32 = arith.constant 0 : i32
    %c0_i32_0 = arith.constant 0 : i32
    %c0_i32_1 = arith.constant 0 : i32
    return %c0_i32, %c0_i32_0 : i32, i32
  }
  func.func @transform_4(%arg0: i32) -> (i32, i32) {
    %c0_i32 = arith.constant 0 : i32
    %c0_i32_0 = arith.constant 0 : i32
    %c0_i32_1 = arith.constant 0 : i32
    return %c0_i32, %c0_i32_0 : i32, i32
  }
  func.func @transform_5(%arg0: i32) -> (i32, i32) {
    %c0_i32 = arith.constant 0 : i32
    %c0_i32_0 = arith.constant 0 : i32
    return %arg0, %c0_i32 : i32, i32
  }
}

</mosaic_0001>

<bundles_post_ra>
// kernel: tpu_custom_call.1
= control target key start
LH: loop header
LB: loop body
LE: loop exit
PB: predicated region body
PF: predicated region fallthrough
CT: control target
= control target key end

     0   :  { %v313_v1 = vmov 0.0   ;;  %vm314_vm0 = vmmov 0   ;;  %vm33_vm1 = vcmask 261120   ;;  %s442_s0 = inlined_call_operand.vmem [shape: f32[8,32], index: 0, kind: input, shape index: {}]   ;;  %s443_s1 = inlined_call_operand.vmem [shape: f32[32,128], index: 1, kind: input, shape index: {}]   ;;  %s444_s2 = inlined_call_operand.vmem [shape: f32[1,128], index: 2, kind: input, shape index: {}]   ;;  %s445_s3 = inlined_call_operand.vmem [shape: f32[128,17], index: 3, kind: input, shape index: {}]   ;;  %s446_s4 = inlined_call_operand.vmem [shape: f32[1,17], index: 4, kind: input, shape index: {}]   ;;  %s447_s5 = inlined_call_operand.hbm [shape: f32[8,17], index: 5, kind: output, shape index: {}]  }
   0x1   :  { %v25_v0 = vld [vmem:[%s443_s1 + $0x18] sm:$0xff]  ;;  %242 = vmatprep.subr.mxu0 %v313_v1  ;;  %v24_v2 = vld [vmem:[%s443_s1 + $0x10] sm:$0xff]  ;;  %250 = vmatprep.mubr.msk.f32.mxu0 %vm314_vm0, %v313_v1  ;;  %v23_v5 = vld [vmem:[%s443_s1 + $0x8] sm:$0xff] }
   0x2   :  { %v123_v3 = vld [vmem:[%s445_s3 + $0x78] sm:$0xff]  ;;  %243 = vmatpush3.msra.mxu0 %v25_v0  ;;  %253 = vmatprep.subr.mxu1 %v313_v1  ;;  %v122_v4 = vld [vmem:[%s445_s3 + $0x70] sm:$0xff]  ;;  %v121_v6 = vld [vmem:[%s445_s3 + $0x68] sm:$0xff] }
   0x3   :  { %244 = vmatprep.subr.mxu0 %v313_v1  ;;  %254 = vmatpush3.msra.mxu1 %v123_v3  ;;  %v22_v7 = vld [vmem:[%s443_s1] sm:$0xff] }
   0x4   :  { %245 = vmatpush3.msra.mxu0 %v24_v2  ;;  %255 = vmatprep.subr.mxu1 %v313_v1  ;;  %v21_v8 = vld [vmem:[%s442_s0] sm:$0xff] }
   0x5   :  { %246 = vmatprep.subr.mxu0 %v313_v1  ;;  %256 = vmatpush3.msra.mxu1 %v122_v4  ;;  %v120_v9 = vld [vmem:[%s445_s3 + $0x60] sm:$0xff] }
   0x6   :  { %247 = vmatpush3.msra.mxu0 %v23_v5  ;;  %257 = vmatprep.subr.mxu1 %v313_v1 }
   0x7   :  { %10 = vsyncpa [#allocation3], 0  ;;  %248 = vmatprep.subr.mxu0 %v313_v1  ;;  %258 = vmatpush3.msra.mxu1 %v121_v6  ;;  %v119_v10 = vld [vmem:[%s445_s3 + $0x58] sm:$0xff]  ;;  %v118_v11 = vld [vmem:[%s445_s3 + $0x50] sm:$0xff]  ;;  %s315_s11 = smov [#allocation2]   ;;  %vm201_vm2 = vcmask 138240  }
   0x8   :  { %249 = vmatpush3.msra.mxu0 %v22_v7  ;;  %259 = vmatprep.subr.mxu1 %v313_v1  ;;  %v117_v12 = vld [vmem:[%s445_s3 + $0x48] sm:$0xff]  ;;  %v116_v13 = vld [vmem:[%s445_s3 + $0x40] sm:$0xff]  ;;  %v115_v14 = vld [vmem:[%s445_s3 + $0x38] sm:$0xff]  ;;  %s209_s0 = sshll.u32 %s315_s11, 4  ;;  %s210_s0 = int_to_ptr.vmem [resolvable:$true] %s209_s0 }
   0x9   :  { %251 = vmatmul.mubr.msk.f32.vlgmr.msra.gmra.mxu0 %vm33_vm1, %v21_v8  ;;  %260 = vmatpush3.msra.mxu1 %v120_v9  ;;  %v114_v15 = vld [vmem:[%s445_s3 + $0x30] sm:$0xff]  ;;  %v113_v16 = vld [vmem:[%s445_s3 + $0x28] sm:$0xff]  ;;  %v112_v17 = vld [vmem:[%s445_s3 + $0x20] sm:$0xff]  ;;  %p296_p1 = scmp.lt.s32.totalorder %s210_s0, %s210_s0 }
   0xa   :  { %261 = vmatprep.subr.mxu1 %v313_v1  ;;  %285 = vmatprep.mubr.msk.f32.mxu1 %vm314_vm0, %v313_v1  ;;  %v111_v18 = vld [vmem:[%s445_s3 + $0x18] sm:$0xff]  ;;  %v110_v19 = vld [vmem:[%s445_s3 + $0x10] sm:$0xff]  ;;  %v109_v20 = vld [vmem:[%s445_s3 + $0x8] sm:$0xff] }
   0xb   :  { %262 = vmatpush3.msra.mxu1 %v119_v10  ;;  %v108_v21 = vld [vmem:[%s445_s3] sm:$0xff]  ;;  %s291_s3 = scalar_lea.vmem %s210_s0, 128 }
   0xc   :  { %263 = vmatprep.subr.mxu1 %v313_v1  ;;  %v217_v22 = vld [vmem:[%s444_s2] ss:$0 sm:$0xff]  ;;  %p292_p0 = scmp.ne.s32.totalorder %s210_s0, %s291_s3  ;;  %p297_p2 = scmp.lt.s32.totalorder %s291_s3, %s291_s3 }
   0xd   :  { %264 = vmatpush3.msra.mxu1 %v118_v11  ;;  %v219_v27 = vld [vmem:[%s446_s4] ss:$0 sm:$0xff] }
   0xe   :  { %265 = vmatprep.subr.mxu1 %v313_v1  ;;  %p298_p3 = por %p297_p2, %p296_p1 }
   0xf   :  { %266 = vmatpush3.msra.mxu1 %v117_v12 }
  0x10   :  { %267 = vmatprep.subr.mxu1 %v313_v1  ;;  %p299_p4 = pnand %p298_p3, %p292_p0 }
  0x11   :  { %268 = vmatpush3.msra.mxu1 %v116_v13 }
  0x12   :  { %269 = vmatprep.subr.mxu1 %v313_v1 }
  0x13   :  { %270 = vmatpush3.msra.mxu1 %v115_v14 }
  0x14   :  { %271 = vmatprep.subr.mxu1 %v313_v1 }
  0x15   :  { %272 = vmatpush3.msra.mxu1 %v114_v15 }
  0x16   :  { %273 = vmatprep.subr.mxu1 %v313_v1 }
  0x17   :  { %274 = vmatpush3.msra.mxu1 %v113_v16 }
  0x18   :  { %275 = vmatprep.subr.mxu1 %v313_v1 }
  0x19   :  { %276 = vmatpush3.msra.mxu1 %v112_v17 }
  0x1a   :  { %277 = vmatprep.subr.mxu1 %v313_v1 }
  0x1b   :  { %278 = vmatpush3.msra.mxu1 %v111_v18 }
  0x1c   :  { %279 = vmatprep.subr.mxu1 %v313_v1 }
  0x1d   :  { %280 = vmatpush3.msra.mxu1 %v110_v19 }
  0x1e   :  { %281 = vmatprep.subr.mxu1 %v313_v1 }
  0x1f   :  { %282 = vmatpush3.msra.mxu1 %v109_v20 }
  0x20   :  { %283 = vmatprep.subr.mxu1 %v313_v1 }
  0x21   :  { %284 = vmatpush3.msra.mxu1 %v108_v21 }
  0xc9   :  { %v103_v23 = vpop.f32.mrf.mxu0 }
  0xca   :  { %v104_v24 = vadd.f32 %v217_v22, %v103_v23 }
  0xcb   :  { %v252_v25 = vpop.f32.mrf.mxu0 }
  0xcc   :  { %v107_v26 = vmax.f32 %v104_v24, 0.0 }
  0xce   :  { %286 = vmatmul.mubr.f32.vlgmr.msra.gmra.mxu1 %v107_v26 }
 0x18e   :  { %v197_v28 = vpop.f32.mrf.mxu1 }
 0x18f   :  { %v198_v29 = vadd.f32 %v219_v27, %v197_v28 }
 0x190   :  { %v287_v30 = vpop.f32.mrf.mxu1 }
 0x191   :  { %202 = vst.msk [vmem:[#allocation2] sm:$0xff] %vm201_vm2, %v198_v29 }
 0x192   :  { %302 = shalt.err (!%p299_p4)
}
 0x193   :  { %212 = dma.vmem_to_hbm [thread:$0]  %s210_s0, 128, %s447_s5, [#allocation3]  }
 0x194   :  { %311 = dma.done.wait [#allocation3], 128  }
 0x195   :  { %312 = vsyncadd [#allocation3], 4294967168 }
 0x196   :  { %216 = vsyncpa [#allocation3], 1 }

</bundles_post_ra>
